<compile_context>
chip_gen: v7x
topology: tpu7x:2x2x1
jax: 0.10.0
libtpu: 0.0.40
codegen_flags: <defaults>
</compile_context>

<pallas_src>
import jax
import jax.numpy as jnp
from jax.experimental import pallas as pl
from jax.experimental.pallas import tpu as pltpu

LANE = 128
MAX_BLOCK_ROWS = 2048          # (2048,128) f32 tile = 1 MiB / input / buffer
MIN_KERNEL_ELEMS = 8 * LANE    # below one minimal (8,128) tile -> plain JAX


def _mse_partial_kernel(s_ref, t_ref, o_ref, acc_ref):
    """Accumulate sum((s - t)^2) along the 'arbitrary' grid axis.

    acc_ref is a full-tile VMEM f32 accumulator: the inner loop is purely
    elementwise (VPU); the cross-lane/sublane reduction runs only once, on the
    last grid step of this output block's residency.
    """
    i = pl.program_id(1)

    @pl.when(i == 0)
    def _():
        acc_ref[...] = jnp.zeros_like(acc_ref)

    d = s_ref[...].astype(jnp.float32) - t_ref[...].astype(jnp.float32)
    acc_ref[...] = acc_ref[...] + d * d

    @pl.when(i == pl.num_programs(1) - 1)
    def _():
        o_ref[...] = jnp.sum(acc_ref[...]).reshape(1, 1, 1)


def hint_loss(fm_s, fm_t):
    """MSE loss: mean of squared differences over all elements (torch default)."""
    assert fm_s.shape == fm_t.shape, "fm_s and fm_t must have the same shape"
    n_elems = fm_s.size
    s_flat = fm_s.reshape(-1)
    t_flat = fm_t.reshape(-1)

    # Tiny feature maps: whole problem smaller than one tile -> skip Pallas.
    if n_elems < MIN_KERNEL_ELEMS:
        d = s_flat.astype(jnp.float32) - t_flat.astype(jnp.float32)
        return (jnp.sum(d * d) / jnp.float32(n_elems)).astype(jnp.float32)

    full_rows = n_elems // LANE

    # 2-way parallel split (fills the second TensorCore on v7x; a harmless
    # sequential outer loop on v5e/v6e). Only split when each chain gets at
    # least one full-size tile.
    n_cores = 2 if full_rows >= 2 * MAX_BLOCK_ROWS else 1
    block_rows = min(MAX_BLOCK_ROWS, (full_rows // n_cores) // 8 * 8)
    rows_per_core = ((full_rows // n_cores) // block_rows) * block_rows
    k_steps = rows_per_core // block_rows
    main_rows = n_cores * rows_per_core
    n_main = main_rows * LANE

    # No pad copy: when n_elems == n_main (common aligned case) this is a pure
    # metadata reshape; otherwise we slice the tile-aligned prefix and handle
    # the small tail in plain JAX below.
    s2d = s_flat[:n_main].reshape(main_rows, LANE)
    t2d = t_flat[:n_main].reshape(main_rows, LANE)

    itemsize = jnp.dtype(fm_s.dtype).itemsize + jnp.dtype(fm_t.dtype).itemsize
    cost = pl.CostEstimate(
        flops=3 * n_main,
        transcendentals=0,
        bytes_accessed=n_main * itemsize,
    )

    partials = pl.pallas_call(
        _mse_partial_kernel,
        out_shape=jax.ShapeDtypeStruct((n_cores, 1, 1), jnp.float32),
        grid_spec=pltpu.PrefetchScalarGridSpec(
            num_scalar_prefetch=0,
            grid=(n_cores, k_steps),
            in_specs=[
                pl.BlockSpec((block_rows, LANE),
                             lambda c, i: (c * k_steps + i, 0)),
                pl.BlockSpec((block_rows, LANE),
                             lambda c, i: (c * k_steps + i, 0)),
            ],
            out_specs=pl.BlockSpec((1, 1, 1), lambda c, i: (c, 0, 0)),
            scratch_shapes=[pltpu.VMEM((block_rows, LANE), jnp.float32)],
        ),
        compiler_params=pltpu.CompilerParams(
            dimension_semantics=("parallel", "arbitrary"),
        ),
        cost_estimate=cost,
    )(s2d, t2d)

    sum_sq = jnp.sum(partials)

    # Tail (elements not covered by full tiles) in plain JAX -- no HBM pad copy.
    if n_main < n_elems:
        ts = s_flat[n_main:].astype(jnp.float32)
        tt = t_flat[n_main:].astype(jnp.float32)
        sum_sq = sum_sq + jnp.sum((ts - tt) ** 2)

    # Mean over the ORIGINAL number of elements (torch F.mse_loss default).
    return (sum_sq / jnp.float32(n_elems)).astype(jnp.float32)


if __name__ == "__main__":
    key = jax.random.PRNGKey(0)
    k1, k2, k3, k4 = jax.random.split(key, 4)

    # Small NCHW feature maps: batch=2, channels=4, spatial=16x16.
    fm_s = jax.random.normal(k1, (2, 4, 16, 16), dtype=jnp.float32)
    fm_t = jax.random.normal(k2, (2, 4, 16, 16), dtype=jnp.float32)
    loss = hint_loss(fm_s, fm_t)
    jax.block_until_ready(loss)
    ref = jnp.mean((fm_s - fm_t) ** 2)
    assert jnp.allclose(loss, ref, rtol=2e-5, atol=1e-6), (loss, ref)

    # Medium check: exercises multi-step accumulation and the 2-chain split.
    fm_s2 = jax.random.normal(k3, (4, 64, 64, 64), dtype=jnp.float32)
    fm_t2 = jax.random.normal(k4, (4, 64, 64, 64), dtype=jnp.float32)
    loss2 = hint_loss(fm_s2, fm_t2)
    jax.block_until_ready(loss2)
    ref2 = jnp.mean((fm_s2 - fm_t2) ** 2)
    assert jnp.allclose(loss2, ref2, rtol=2e-5, atol=1e-6), (loss2, ref2)

    print("KERNEL_OK")
</pallas_src>

<mosaic_0001>
module attributes {stable_mosaic.version = 11 : i64} {
  func.func @_mse_partial_kernel(%arg0: i32, %arg1: i32, %arg2: memref<16x128xf32, #tpu.memory_space<vmem>>, %arg3: memref<16x128xf32, #tpu.memory_space<vmem>>, %arg4: memref<1x1x1xf32, #tpu.memory_space<vmem>>, %arg5: memref<16x128xf32, #tpu.memory_space<vmem>>) attributes {dimension_semantics = [#tpu.dimension_semantics<parallel>, #tpu.dimension_semantics<arbitrary>], iteration_bounds = array<i64: 1, 1>, scalar_prefetch = 0 : i64, scratch_operands = 1 : i64, tpu.core_type = #tpu.core_type<tc>, window_params = [{transform_indices = @transform_0, window_bounds = array<i64: 16, 128>}, {transform_indices = @transform_1, window_bounds = array<i64: 16, 128>}, {transform_indices = @transform_2, window_bounds = array<i64: 1, 1, 1>}]} {
    %c0_i32 = arith.constant 0 : i32
    %0 = arith.cmpi eq, %arg1, %c0_i32 : i32
    %1 = arith.extui %0 : i1 to i32
    %c0_i32_0 = arith.constant 0 : i32
    %2 = arith.cmpi ne, %1, %c0_i32_0 : i32
    scf.if %2 {
      %cst = arith.constant 0.000000e+00 : f32
      %13 = vector.broadcast %cst : f32 to vector<16x128xf32>
      %c0_10 = arith.constant 0 : index
      %c0_11 = arith.constant 0 : index
      %14 = vector.load %arg5[%c0_10, %c0_11] : memref<16x128xf32, #tpu.memory_space<vmem>>, vector<16x128xf32>
      tpu.vector_store %arg5[%c0_10, %c0_11], %13 {strides = array<i32>} : memref<16x128xf32, #tpu.memory_space<vmem>>, vector<16x128xf32>,
    } else {
    }
    %c0 = arith.constant 0 : index
    %c0_1 = arith.constant 0 : index
    %3 = vector.load %arg2[%c0, %c0_1] : memref<16x128xf32, #tpu.memory_space<vmem>>, vector<16x128xf32>
    %c0_2 = arith.constant 0 : index
    %c0_3 = arith.constant 0 : index
    %4 = vector.load %arg3[%c0_2, %c0_3] : memref<16x128xf32, #tpu.memory_space<vmem>>, vector<16x128xf32>
    %5 = arith.subf %3, %4 : vector<16x128xf32>
    %c0_4 = arith.constant 0 : index
    %c0_5 = arith.constant 0 : index
    %6 = vector.load %arg5[%c0_4, %c0_5] : memref<16x128xf32, #tpu.memory_space<vmem>>, vector<16x128xf32>
    %7 = arith.mulf %5, %5 : vector<16x128xf32>
    %8 = arith.addf %6, %7 : vector<16x128xf32>
    %c0_6 = arith.constant 0 : index
    %c0_7 = arith.constant 0 : index
    %9 = vector.load %arg5[%c0_6, %c0_7] : memref<16x128xf32, #tpu.memory_space<vmem>>, vector<16x128xf32>
    tpu.vector_store %arg5[%c0_6, %c0_7], %8 {strides = array<i32>} : memref<16x128xf32, #tpu.memory_space<vmem>>, vector<16x128xf32>,
    %c0_i32_8 = arith.constant 0 : i32
    %10 = arith.cmpi eq, %arg1, %c0_i32_8 : i32
    %11 = arith.extui %10 : i1 to i32
    %c0_i32_9 = arith.constant 0 : i32
    %12 = arith.cmpi ne, %11, %c0_i32_9 : i32
    scf.if %12 {
      %c0_10 = arith.constant 0 : index
      %c0_11 = arith.constant 0 : index
      %13 = vector.load %arg5[%c0_10, %c0_11] : memref<16x128xf32, #tpu.memory_space<vmem>>, vector<16x128xf32>
      %14 = vector.shape_cast %13 : vector<16x128xf32> to vector<1x16x128xf32>
      %cst = arith.constant dense<0.000000e+00> : vector<1xf32>
      %15 = vector.multi_reduction <add>, %14, %cst [1, 2] : vector<1x16x128xf32> to vector<1xf32>
      %16 = vector.shape_cast %15 : vector<1xf32> to vector<1x1x1xf32>
      %17 = vector.extract %16[0, 0, 0] : f32 from vector<1x1x1xf32>
      %18 = vector.broadcast %17 : f32 to vector<1x1x1xf32>
      %c0_12 = arith.constant 0 : index
      %c0_13 = arith.constant 0 : index
      %c0_14 = arith.constant 0 : index
      %19 = vector.load %arg4[%c0_12, %c0_13, %c0_14] : memref<1x1x1xf32, #tpu.memory_space<vmem>>, vector<1x1x1xf32>
      tpu.vector_store %arg4[%c0_12, %c0_13, %c0_14], %18 {strides = array<i32>} : memref<1x1x1xf32, #tpu.memory_space<vmem>>, vector<1x1x1xf32>,
    } else {
    }
    return
  }
  func.func @transform_0(%arg0: i32, %arg1: i32) -> (i32, i32) {
    %c1_i32 = arith.constant 1 : i32
    %0 = arith.muli %arg0, %c1_i32 : i32
    %1 = arith.addi %0, %arg1 : i32
    %c0_i32 = arith.constant 0 : i32
    %c0_i32_0 = arith.constant 0 : i32
    return %1, %c0_i32 : i32, i32
  }
  func.func @transform_1(%arg0: i32, %arg1: i32) -> (i32, i32) {
    %c1_i32 = arith.constant 1 : i32
    %0 = arith.muli %arg0, %c1_i32 : i32
    %1 = arith.addi %0, %arg1 : i32
    %c0_i32 = arith.constant 0 : i32
    %c0_i32_0 = arith.constant 0 : i32
    return %1, %c0_i32 : i32, i32
  }
  func.func @transform_2(%arg0: i32, %arg1: i32) -> (i32, i32, i32) {
    %c0_i32 = arith.constant 0 : i32
    %c0_i32_0 = arith.constant 0 : i32
    %c0_i32_1 = arith.constant 0 : i32
    return %arg0, %c0_i32, %c0_i32_0 : i32, i32, i32
  }
}

</mosaic_0001>

<bundles_post_ra>
// kernel: tpu_custom_call.1
= control target key start
LH: loop header
LB: loop body
LE: loop exit
PB: predicated region body
PF: predicated region fallthrough
CT: control target
= control target key end

     0   :  { %7 = vsyncpa [#allocation4], 0  ;;  %s241_s0 = inlined_call_operand.hbm [shape: f32[16,128], index: 0, kind: input, shape index: {}]   ;;  %s242_s1 = inlined_call_operand.hbm [shape: f32[16,128], index: 1, kind: input, shape index: {}]   ;;  %s243_s2 = inlined_call_operand.hbm [shape: f32[1,1,1], index: 2, kind: output, shape index: {}]  }
   0x1   :  { %8 = vsyncpa [#allocation7], 0 }
   0x2   :  { %9 = vsyncpa [#allocation5], 0  ;;  %s185_s9 = smov [#allocation3]   ;;  %s113_s13 = scalar_lea.hbm %s241_s0, 256 }
   0x3   :  { %s19_s10 = sshll.u32 %s185_s9, 4  ;;  %p114_p0 = scmp.ne.s32.totalorder %s241_s0, %s113_s13  ;;  %s20_s10 = int_to_ptr.vmem [resolvable:$true] %s19_s10 }
   0x4   :  { %p117_p1 = scmp.lt.u32.totalorder %s113_s13, %s241_s0 }
   0x6   :  { %p119_p2 = pnand %p117_p1, %p114_p0 }
   0x8   :  { %122 = shalt.err (!%p119_p2)
}
   0x9   :  { %s123_s18 = scalar_lea.vmem %s20_s10, 256  ;;  %p128_p4 = scmp.lt.s32.totalorder %s20_s10, %s20_s10 }
   0xa   :  { %p124_p3 = scmp.ne.s32.totalorder %s20_s10, %s123_s18  ;;  %p129_p5 = scmp.lt.s32.totalorder %s123_s18, %s123_s18 }
   0xc   :  { %p130_p6 = por %p129_p5, %p128_p4 }
   0xe   :  { %p131_p7 = pnand %p130_p6, %p124_p3 }
  0x10   :  { %134 = shalt.err (!%p131_p7)
}
  0x11   :  { %s186_s19 = smov 128   ;;  %s187_s20 = smov 8  }
  0x12   :  { %25 = dma.hbm_to_vmem [thread:$0]  %s241_s0, 256, %s20_s10, [#allocation4], %s186_s19, %s186_s19, %s187_s20  }
  0x13   :  { %s188_s23 = smov [#allocation6]   ;;  %s135_s27 = scalar_lea.hbm %s242_s1, 256 }
  0x14   :  { %s35_s24 = sshll.u32 %s188_s23, 4  ;;  %p136_p8 = scmp.ne.s32.totalorder %s242_s1, %s135_s27  ;;  %s36_s24 = int_to_ptr.vmem [resolvable:$true] %s35_s24 }
  0x15   :  { %p139_p9 = scmp.lt.u32.totalorder %s135_s27, %s242_s1 }
  0x17   :  { %p141_p10 = pnand %p139_p9, %p136_p8 }
  0x19   :  { %144 = shalt.err (!%p141_p10)
}
  0x1a   :  { %s145_s4 = scalar_lea.vmem %s36_s24, 256  ;;  %p150_p12 = scmp.lt.s32.totalorder %s36_s24, %s36_s24 }
  0x1b   :  { %p146_p11 = scmp.ne.s32.totalorder %s36_s24, %s145_s4  ;;  %p151_p13 = scmp.lt.s32.totalorder %s145_s4, %s145_s4 }
  0x1d   :  { %p152_p0 = por %p151_p13, %p150_p12 }
  0x1f   :  { %p153_p1 = pnand %p152_p0, %p146_p11 }
  0x21   :  { %156 = shalt.err (!%p153_p1)
}
  0x22   :  { %41 = dma.hbm_to_vmem [thread:$0]  %s242_s1, 256, %s36_s24, [#allocation7], %s186_s19, %s186_s19, %s187_s20  }
  0x23   :  { %179 = dma.done.wait [#allocation4], 256  }
  0x24   :  { %180 = vsyncadd [#allocation4], 4294967040 }
  0x25   :  { %181 = dma.done.wait [#allocation7], 256  }
  0x26   :  { %182 = vsyncadd [#allocation7], 4294967040  ;;  %v58_v0 = vld [vmem:[#allocation3] sm:$0xff]  ;;  %v59_v1 = vld [vmem:[#allocation3 + $0x8] sm:$0xff]  ;;  %s189_s1 = smov [#allocation8]   ;;  %vm88_vm0 = vcmask 0  }
  0x27   :  { %v60_v2 = vld [vmem:[#allocation6] sm:$0xff]  ;;  %v61_v3 = vld [vmem:[#allocation6 + $0x8] sm:$0xff]  ;;  %s96_s6 = sshll.u32 %s189_s1, 4  ;;  %s97_s6 = int_to_ptr.vmem [resolvable:$true] %s96_s6 }
  0x28   :  { %v62_v4 = vsub.f32 %v58_v0, %v60_v2  ;;  %v63_v5 = vsub.f32 %v59_v1, %v61_v3  ;;  %s157_s8 = scalar_lea.vmem %s97_s6, 16  ;;  %s161_s9 = scalar_lea.vmem %s97_s6, 32 }
  0x29   :  { %p158_p2 = scmp.ne.s32.totalorder %s97_s6, %s157_s8  ;;  %p162_p3 = scmp.lt.s32.totalorder %s97_s6, %s97_s6 }
  0x2a   :  { %v66_v6 = vmul.f32 %v62_v4, %v62_v4  ;;  %v67_v7 = vmul.f32 %v63_v5, %v63_v5  ;;  %p163_p4 = scmp.lt.s32.totalorder %s161_s9, %s157_s8 }
  0x2c   :  { %v77_v8 = vadd.f32 %v67_v7, %v66_v6  ;;  %p164_p5 = por %p163_p4, %p162_p3 }
  0x2e   :  { %78 = vadd.xlane.f32.xlu0 %v77_v8  ;;  %p165_p6 = pnand %p164_p5, %p158_p2 }
  0xbb   :  { %v79_v9 = vpop.xlane.xlu0 %78 }
  0xbc   :  { %v80_v10 = vrot.slane %v79_v9, 4 }
  0xbe   :  { %v81_v11 = vadd.f32 %v80_v10, %v79_v9 }
  0xc0   :  { %v82_v12 = vrot.slane %v81_v11, 2 }
  0xc2   :  { %v83_v13 = vadd.f32 %v82_v12, %v81_v11 }
  0xc4   :  { %v84_v14 = vrot.slane %v83_v13, 1 }
  0xc6   :  { %v85_v15 = vadd.f32 %v84_v14, %v83_v13 }
  0xc8   :  { %106 = vpush %v85_v15 }
  0xf9   :  { %s107_s7 = spop %106 }
  0xfa   :  { %v87_v16 = vstv %s107_s7 }
  0xfb   :  { %89 = vst.msk [vmem:[#allocation8] sm:$0x1] %vm88_vm0, %v87_v16 }
  0xfc   :  { %168 = shalt.err (!%p165_p6)
}
  0xfd   :  { %s169_s12 = scalar_lea.hbm %s243_s2, 16 }
  0xfe   :  { %p170_p7 = scmp.ne.s32.totalorder %s243_s2, %s169_s12  ;;  %p173_p8 = scmp.lt.u32.totalorder %s169_s12, %s243_s2 }
 0x100   :  { %p175_p9 = pnand %p173_p8, %p170_p7 }
 0x102   :  { %178 = shalt.err (!%p175_p9)
}
 0x103   :  { %99 = dma.vmem_to_hbm [thread:$0]  %s97_s6, 16, %s243_s2, [#allocation5]  }
 0x104   :  { %183 = dma.done.wait [#allocation5], 16  }
 0x105   :  { %184 = vsyncadd [#allocation5], 4294967280 }
 0x106   :  { %103 = vsyncpa [#allocation4], 1 }
 0x107   :  { %104 = vsyncpa [#allocation7], 1 }
 0x108   :  { %105 = vsyncpa [#allocation5], 1 }

</bundles_post_ra>
